<compile_context>
chip_gen: v7x
topology: tpu7x:2x2x1
jax: 0.10.0
libtpu: 0.0.40
codegen_flags: <defaults>
</compile_context>

<pallas_src>
import functools

import jax
import jax.numpy as jnp
import numpy as np
from jax import lax
from jax.experimental import pallas as pl
from jax.experimental.pallas import tpu as pltpu

OUT_PAD = 128  # lane-dense classifier output width (sliced to num_classes outside)


# ----------------------------- Pallas kernel --------------------------------
def cnn_forward_kernel(x_ref, w_ih_ref, b_ih_ref, w_hh_ref, b_hh_ref,
                       w_fc_ref, b_fc_ref, w_out_ref, b_out_ref, out_ref):
    """Whole forward for one batch tile.

    x_ref    : (Bt, L)            input rows
    w_ih_ref : (L, L*C)           banded conv-1 matrix (Cin=1)
    b_ih_ref : (1, L*C)
    w_hh_ref : (hl-1, L*C, L*C)   banded hidden-conv matrices
    b_hh_ref : (hl-1, 1, L*C)
    w_fc_ref : (L*C, idim)        FC weight in the kernel's l*C+c order
    b_fc_ref : (1, idim)
    w_out_ref: (idim, OUT_PAD)    zero-padded to 128 lanes
    b_out_ref: (1, OUT_PAD)
    out_ref  : (Bt, OUT_PAD)
    """
    x = x_ref[...].astype(jnp.float32)

    # ih_conv + ReLU: one matmul, contraction L.
    h = jnp.maximum(
        jnp.dot(x, w_ih_ref[...], preferred_element_type=jnp.float32)
        + b_ih_ref[...], 0.0)

    # hh_convs: (hl-1) x [banded matmul + ReLU], contraction L*C. Static loop.
    for i in range(w_hh_ref.shape[0]):
        h = jnp.maximum(
            jnp.dot(h, w_hh_ref[i], preferred_element_type=jnp.float32)
            + b_hh_ref[i], 0.0)

    # fc_layer + ReLU: single matmul, contraction L*C.
    h = jnp.maximum(
        jnp.dot(h, w_fc_ref[...], preferred_element_type=jnp.float32)
        + b_fc_ref[...], 0.0)

    # out_layer (lane-padded => unmasked vector store).
    out_ref[...] = (jnp.dot(h, w_out_ref[...], preferred_element_type=jnp.float32)
                    + b_out_ref[...])


# ------------------- wrapper: weight re-layout + pallas_call ------------------
def _conv_band_matrix(w, L, pad):
    """Fold a 'same'-padded Conv1d weight (Cout, Cin, K) into a banded matrix.

    Returns W of shape (L*Cin, L*Cout) so that, for activations laid out flat as
    l*C + c, the convolution is `h_out = h_in @ W`:
        W[l_in*Cin + ci, l_out*Cout + co] = w[co, ci, l_in - l_out + pad]
    (zero outside the kernel support — this also encodes the zero padding).
    """
    Cout, Cin, K = w.shape
    l_in = jnp.arange(L)[:, None, None, None]
    ci = jnp.arange(Cin)[None, :, None, None]
    l_out = jnp.arange(L)[None, None, :, None]
    co = jnp.arange(Cout)[None, None, None, :]
    k = l_in - l_out + pad
    valid = (k >= 0) & (k < K)
    vals = w[co, ci, jnp.clip(k, 0, K - 1)]            # (L, Cin, L, Cout)
    vals = jnp.where(valid, vals, 0.0)
    return vals.reshape(L * Cin, L * Cout)


def cnn_classifier_forward(x, params, *, out_channels, hl, kernel_size, idim,
                           num_classes, batch_tile=128):
    assert kernel_size % 2 == 1, "odd kernel size required (same-padding constraint)"
    assert hl >= 2  # TODO(synk): hl == 1 (no hidden convs) path not wired up.
    # TODO(synk): use_maxpool=True (nn.MaxPool1d) branch not implemented.

    B = x.shape[0]
    C, K, L = out_channels, kernel_size, idim
    LC = L * C
    pad = (K - 1) // 2

    # ---- host-side weight re-layout (free glue) ----
    w_ih_k = _conv_band_matrix(params["w_ih"], L, pad)                 # (L, LC)
    b_ih_k = jnp.tile(params["b_ih"], L).reshape(1, LC)
    w_hh_k = jnp.stack([_conv_band_matrix(params["w_hh"][i], L, pad)
                        for i in range(hl - 1)])                       # (hl-1, LC, LC)
    b_hh_k = jnp.tile(params["b_hh"], (1, L)).reshape(hl - 1, 1, LC)
    # PyTorch flattens NCW activations as c*L + l; kernel layout is l*C + c.
    w_fc_k = params["w_fc"].reshape(idim, C, L).transpose(2, 1, 0).reshape(LC, idim)
    b_fc_k = params["b_fc"].reshape(1, idim)
    # Lane-dense output: zero-pad classes up to OUT_PAD.
    w_out_k = jnp.zeros((idim, OUT_PAD), jnp.float32).at[:, :num_classes].set(
        params["w_out"].T)
    b_out_k = jnp.zeros((1, OUT_PAD), jnp.float32).at[:, :num_classes].set(
        params["b_out"])

    # ---- batch tiling (parallel grid axis) ----
    Bt = min(batch_tile, max(8, B))
    Bt = max(8, (Bt // 8) * 8)
    B_padded = ((B + Bt - 1) // Bt) * Bt
    if B_padded != B:
        x = jnp.pad(x, ((0, B_padded - B), (0, 0)))
    grid = (B_padded // Bt,)

    def _const(shape):
        zeros = (0,) * len(shape)
        return pl.BlockSpec(shape, lambda i, z=zeros: z)   # resident weights

    flops = 2 * B_padded * (L * LC + (hl - 1) * LC * LC + LC * idim
                            + idim * OUT_PAD)
    bytes_accessed = 4 * (B_padded * (L + OUT_PAD) + L * LC + LC
                          + (hl - 1) * (LC * LC + LC) + LC * idim + idim
                          + idim * OUT_PAD + OUT_PAD)

    out = pl.pallas_call(
        cnn_forward_kernel,
        out_shape=jax.ShapeDtypeStruct((B_padded, OUT_PAD), jnp.float32),
        grid=grid,
        in_specs=[
            pl.BlockSpec((Bt, L), lambda i: (i, 0)),
            _const(w_ih_k.shape), _const(b_ih_k.shape),
            _const(w_hh_k.shape), _const(b_hh_k.shape),
            _const(w_fc_k.shape), _const(b_fc_k.shape),
            _const(w_out_k.shape), _const(b_out_k.shape),
        ],
        out_specs=pl.BlockSpec((Bt, OUT_PAD), lambda i: (i, 0)),
        compiler_params=pltpu.CompilerParams(
            dimension_semantics=("parallel",),
            vmem_limit_bytes=32 * 1024 * 1024),
        cost_estimate=pl.CostEstimate(flops=flops, transcendentals=0,
                                      bytes_accessed=bytes_accessed),
    )(x, w_ih_k, b_ih_k, w_hh_k, b_hh_k, w_fc_k, b_fc_k, w_out_k, b_out_k)

    return out[:B, :num_classes]


# -------------------------- deterministic init -------------------------------
def _uniform(key, shape, fan_in):
    bound = 1.0 / np.sqrt(fan_in)
    return jax.random.uniform(key, shape, jnp.float32, -bound, bound)


def init_params(key, *, out_channels, hl, kernel_size, idim, num_classes):
    C, K = out_channels, kernel_size
    keys = jax.random.split(key, 8)
    p = {}
    p["w_ih"] = _uniform(keys[0], (C, 1, K), 1 * K)
    p["b_ih"] = _uniform(keys[1], (C,), 1 * K)
    p["w_hh"] = _uniform(keys[2], (hl - 1, C, C, K), C * K)
    p["b_hh"] = _uniform(keys[3], (hl - 1, C), C * K)
    p["w_fc"] = _uniform(keys[4], (idim, C * idim), C * idim)
    p["b_fc"] = _uniform(keys[5], (idim,), C * idim)
    p["w_out"] = _uniform(keys[6], (num_classes, idim), idim)
    p["b_out"] = _uniform(keys[7], (num_classes,), idim)
    return p


# ------------------------- pure-JAX reference --------------------------------
def ref_forward(x, p, *, kernel_size):
    pad = (kernel_size - 1) // 2

    def conv(h, w, b):
        y = lax.conv_general_dilated(h, w, window_strides=(1,),
                                     padding=[(pad, pad)],
                                     dimension_numbers=("NCH", "OIH", "NCH"))
        return y + b[None, :, None]

    h = x[:, None, :]                                   # (B, 1, L)  NCW
    h = jax.nn.relu(conv(h, p["w_ih"], p["b_ih"]))
    for i in range(p["w_hh"].shape[0]):
        h = jax.nn.relu(conv(h, p["w_hh"][i], p["b_hh"][i]))
    flat = h.reshape(h.shape[0], -1)                    # (B, C*L), c*L + l order
    h2 = jax.nn.relu(flat @ p["w_fc"].T + p["b_fc"])
    return h2 @ p["w_out"].T + p["b_out"]


# ---------------------------------- main --------------------------------------
if __name__ == "__main__":
    out_channels, hl, kernel_size, idim, num_classes = 4, 2, 3, 16, 2
    batch = 256                         # 2 grid steps of 128-row batch tiles

    key = jax.random.PRNGKey(0)
    kx, kp = jax.random.split(key)
    x = jax.random.normal(kx, (batch, idim), jnp.float32)
    params = init_params(kp, out_channels=out_channels, hl=hl,
                         kernel_size=kernel_size, idim=idim,
                         num_classes=num_classes)

    fwd = functools.partial(cnn_classifier_forward, out_channels=out_channels,
                            hl=hl, kernel_size=kernel_size, idim=idim,
                            num_classes=num_classes, batch_tile=128)
    out = jax.jit(fwd)(x, params)
    out = jax.block_until_ready(out)

    ref = ref_forward(x, params, kernel_size=kernel_size)
    np.testing.assert_allclose(np.asarray(out), np.asarray(ref),
                               atol=1e-3, rtol=1e-3)

    print("KERNEL_OK")
</pallas_src>

<mosaic_0001>
module attributes {stable_mosaic.version = 11 : i64} {
  func.func @cnn_forward_kernel(%arg0: i32, %arg1: memref<128x16xf32, #tpu.memory_space<vmem>>, %arg2: memref<16x64xf32, #tpu.memory_space<vmem>>, %arg3: memref<1x64xf32, #tpu.memory_space<vmem>>, %arg4: memref<1x64x64xf32, #tpu.memory_space<vmem>>, %arg5: memref<1x1x64xf32, #tpu.memory_space<vmem>>, %arg6: memref<64x16xf32, #tpu.memory_space<vmem>>, %arg7: memref<1x16xf32, #tpu.memory_space<vmem>>, %arg8: memref<16x128xf32, #tpu.memory_space<vmem>>, %arg9: memref<1x128xf32, #tpu.memory_space<vmem>>, %arg10: memref<128x128xf32, #tpu.memory_space<vmem>>) attributes {dimension_semantics = [#tpu.dimension_semantics<parallel>], iteration_bounds = array<i64: 2>, scalar_prefetch = 0 : i64, scratch_operands = 0 : i64, tpu.core_type = #tpu.core_type<tc>, window_params = [{transform_indices = @transform_0, window_bounds = array<i64: 128, 16>}, {pipeline_mode = #tpu.pipeline_mode<synchronous>, transform_indices = @transform_1, window_bounds = array<i64: 16, 64>}, {pipeline_mode = #tpu.pipeline_mode<synchronous>, transform_indices = @transform_2, window_bounds = array<i64: 1, 64>}, {pipeline_mode = #tpu.pipeline_mode<synchronous>, transform_indices = @transform_3, window_bounds = array<i64: 1, 64, 64>}, {pipeline_mode = #tpu.pipeline_mode<synchronous>, transform_indices = @transform_4, window_bounds = array<i64: 1, 1, 64>}, {pipeline_mode = #tpu.pipeline_mode<synchronous>, transform_indices = @transform_5, window_bounds = array<i64: 64, 16>}, {pipeline_mode = #tpu.pipeline_mode<synchronous>, transform_indices = @transform_6, window_bounds = array<i64: 1, 16>}, {pipeline_mode = #tpu.pipeline_mode<synchronous>, transform_indices = @transform_7, window_bounds = array<i64: 16, 128>}, {pipeline_mode = #tpu.pipeline_mode<synchronous>, transform_indices = @transform_8, window_bounds = array<i64: 1, 128>}, {transform_indices = @transform_9, window_bounds = array<i64: 128, 128>}]} {
    %c0 = arith.constant 0 : index
    %c0_0 = arith.constant 0 : index
    %0 = vector.load %arg1[%c0, %c0_0] : memref<128x16xf32, #tpu.memory_space<vmem>>, vector<128x16xf32>
    %c0_1 = arith.constant 0 : index
    %c0_2 = arith.constant 0 : index
    %1 = vector.load %arg2[%c0_1, %c0_2] : memref<16x64xf32, #tpu.memory_space<vmem>>, vector<16x64xf32>
    %cst = arith.constant dense<0.000000e+00> : vector<128x64xf32>
    %2 = tpu.matmul %0, %1, %cst {dimension_numbers = #tpu.dot_dimension_numbers<[1], [0], [0], [1], [0, 0, 1, 1], [], []>} : vector<128x16xf32>, vector<16x64xf32>, vector<128x64xf32> -> vector<128x64xf32>
    %c0_3 = arith.constant 0 : index
    %c0_4 = arith.constant 0 : index
    %3 = vector.load %arg3[%c0_3, %c0_4] : memref<1x64xf32, #tpu.memory_space<vmem>>, vector<1x64xf32>
    %4 = vector.broadcast %3 : vector<1x64xf32> to vector<128x64xf32>
    %5 = arith.addf %2, %4 : vector<128x64xf32>
    %cst_5 = arith.constant 0.000000e+00 : f32
    %6 = vector.broadcast %cst_5 : f32 to vector<128x64xf32>
    %7 = arith.maximumf %5, %6 : vector<128x64xf32>
    %c0_6 = arith.constant 0 : index
    %c0_7 = arith.constant 0 : index
    %c0_8 = arith.constant 0 : index
    %8 = vector.load %arg4[%c0_6, %c0_7, %c0_8] : memref<1x64x64xf32, #tpu.memory_space<vmem>>, vector<1x64x64xf32>
    %9 = vector.shape_cast %8 : vector<1x64x64xf32> to vector<64x64xf32>
    %cst_9 = arith.constant dense<0.000000e+00> : vector<128x64xf32>
    %10 = tpu.matmul %7, %9, %cst_9 {dimension_numbers = #tpu.dot_dimension_numbers<[1], [0], [0], [1], [0, 0, 1, 1], [], []>} : vector<128x64xf32>, vector<64x64xf32>, vector<128x64xf32> -> vector<128x64xf32>
    %c0_10 = arith.constant 0 : index
    %c0_11 = arith.constant 0 : index
    %c0_12 = arith.constant 0 : index
    %11 = vector.load %arg5[%c0_10, %c0_11, %c0_12] : memref<1x1x64xf32, #tpu.memory_space<vmem>>, vector<1x1x64xf32>
    %12 = vector.shape_cast %11 : vector<1x1x64xf32> to vector<1x64xf32>
    %13 = vector.broadcast %12 : vector<1x64xf32> to vector<128x64xf32>
    %14 = arith.addf %10, %13 : vector<128x64xf32>
    %cst_13 = arith.constant 0.000000e+00 : f32
    %15 = vector.broadcast %cst_13 : f32 to vector<128x64xf32>
    %16 = arith.maximumf %14, %15 : vector<128x64xf32>
    %c0_14 = arith.constant 0 : index
    %c0_15 = arith.constant 0 : index
    %17 = vector.load %arg6[%c0_14, %c0_15] : memref<64x16xf32, #tpu.memory_space<vmem>>, vector<64x16xf32>
    %cst_16 = arith.constant dense<0.000000e+00> : vector<128x16xf32>
    %18 = tpu.matmul %16, %17, %cst_16 {dimension_numbers = #tpu.dot_dimension_numbers<[1], [0], [0], [1], [0, 0, 1, 1], [], []>} : vector<128x64xf32>, vector<64x16xf32>, vector<128x16xf32> -> vector<128x16xf32>
    %c0_17 = arith.constant 0 : index
    %c0_18 = arith.constant 0 : index
    %19 = vector.load %arg7[%c0_17, %c0_18] : memref<1x16xf32, #tpu.memory_space<vmem>>, vector<1x16xf32>
    %20 = vector.broadcast %19 : vector<1x16xf32> to vector<128x16xf32>
    %21 = arith.addf %18, %20 : vector<128x16xf32>
    %cst_19 = arith.constant 0.000000e+00 : f32
    %22 = vector.broadcast %cst_19 : f32 to vector<128x16xf32>
    %23 = arith.maximumf %21, %22 : vector<128x16xf32>
    %c0_20 = arith.constant 0 : index
    %c0_21 = arith.constant 0 : index
    %24 = vector.load %arg8[%c0_20, %c0_21] : memref<16x128xf32, #tpu.memory_space<vmem>>, vector<16x128xf32>
    %cst_22 = arith.constant dense<0.000000e+00> : vector<128x128xf32>
    %25 = tpu.matmul %23, %24, %cst_22 {dimension_numbers = #tpu.dot_dimension_numbers<[1], [0], [0], [1], [0, 0, 1, 1], [], []>} : vector<128x16xf32>, vector<16x128xf32>, vector<128x128xf32> -> vector<128x128xf32>
    %c0_23 = arith.constant 0 : index
    %c0_24 = arith.constant 0 : index
    %26 = vector.load %arg9[%c0_23, %c0_24] : memref<1x128xf32, #tpu.memory_space<vmem>>, vector<1x128xf32>
    %27 = vector.broadcast %26 : vector<1x128xf32> to vector<128x128xf32>
    %28 = arith.addf %25, %27 : vector<128x128xf32>
    %c0_25 = arith.constant 0 : index
    %c0_26 = arith.constant 0 : index
    %29 = vector.load %arg10[%c0_25, %c0_26] : memref<128x128xf32, #tpu.memory_space<vmem>>, vector<128x128xf32>
    tpu.vector_store %arg10[%c0_25, %c0_26], %28 {strides = array<i32>} : memref<128x128xf32, #tpu.memory_space<vmem>>, vector<128x128xf32>,
    return
  }
  func.func @transform_0(%arg0: i32) -> (i32, i32) {
    %c0_i32 = arith.constant 0 : i32
    %c0_i32_0 = arith.constant 0 : i32
    return %arg0, %c0_i32 : i32, i32
  }
  func.func @transform_1(%arg0: i32) -> (i32, i32) {
    %c0_i32 = arith.constant 0 : i32
    %c0_i32_0 = arith.constant 0 : i32
    %c0_i32_1 = arith.constant 0 : i32
    return %c0_i32, %c0_i32_0 : i32, i32
  }
  func.func @transform_2(%arg0: i32) -> (i32, i32) {
    %c0_i32 = arith.constant 0 : i32
    %c0_i32_0 = arith.constant 0 : i32
    %c0_i32_1 = arith.constant 0 : i32
    return %c0_i32, %c0_i32_0 : i32, i32
  }
  func.func @transform_3(%arg0: i32) -> (i32, i32, i32) {
    %c0_i32 = arith.constant 0 : i32
    %c0_i32_0 = arith.constant 0 : i32
    %c0_i32_1 = arith.constant 0 : i32
    %c0_i32_2 = arith.constant 0 : i32
    return %c0_i32, %c0_i32_0, %c0_i32_1 : i32, i32, i32
  }
  func.func @transform_4(%arg0: i32) -> (i32, i32, i32) {
    %c0_i32 = arith.constant 0 : i32
    %c0_i32_0 = arith.constant 0 : i32
    %c0_i32_1 = arith.constant 0 : i32
    %c0_i32_2 = arith.constant 0 : i32
    return %c0_i32, %c0_i32_0, %c0_i32_1 : i32, i32, i32
  }
  func.func @transform_5(%arg0: i32) -> (i32, i32) {
    %c0_i32 = arith.constant 0 : i32
    %c0_i32_0 = arith.constant 0 : i32
    %c0_i32_1 = arith.constant 0 : i32
    return %c0_i32, %c0_i32_0 : i32, i32
  }
  func.func @transform_6(%arg0: i32) -> (i32, i32) {
    %c0_i32 = arith.constant 0 : i32
    %c0_i32_0 = arith.constant 0 : i32
    %c0_i32_1 = arith.constant 0 : i32
    return %c0_i32, %c0_i32_0 : i32, i32
  }
  func.func @transform_7(%arg0: i32) -> (i32, i32) {
    %c0_i32 = arith.constant 0 : i32
    %c0_i32_0 = arith.constant 0 : i32
    %c0_i32_1 = arith.constant 0 : i32
    return %c0_i32, %c0_i32_0 : i32, i32
  }
  func.func @transform_8(%arg0: i32) -> (i32, i32) {
    %c0_i32 = arith.constant 0 : i32
    %c0_i32_0 = arith.constant 0 : i32
    %c0_i32_1 = arith.constant 0 : i32
    return %c0_i32, %c0_i32_0 : i32, i32
  }
  func.func @transform_9(%arg0: i32) -> (i32, i32) {
    %c0_i32 = arith.constant 0 : i32
    %c0_i32_0 = arith.constant 0 : i32
    return %arg0, %c0_i32 : i32, i32
  }
}

</mosaic_0001>

<bundles_post_ra>
// kernel: tile.14
= control target key start
LH: loop header
LB: loop body
LE: loop exit
PB: predicated region body
PF: predicated region fallthrough
CT: control target
= control target key end

     0   :  { %s131_s10 = smov 60   ;;  %s132_s11 = smov 52   ;;  %vm3_vm0 = vcmask 31744   ;;  %vm9_vm1 = vcmask 523744   ;;  %vm15_vm2 = vcmask 490944   ;;  %vm21_vm3 = vcmask 458144   ;;  %s207_s0 = inlined_call_operand.vmem [shape: f32[16,4], index: 0, kind: input, shape index: {}]   ;;  %s208_s1 = inlined_call_operand.vmem [shape: f32[1,64], index: 1, kind: output, shape index: {}]  }
   0x1   :  { %v101_v0 = vld [vmem:[%s207_s0 + $0xf] sm:$0x1]   ;;  %v103_v1 = vld [vmem:[%s207_s0 + $0xd] sm:$0x1]   ;;  %v102_v2 = vld [vmem:[%s207_s0 + $0xe] sm:$0x1]  }
   0x2   :  { %7 = vrot.lane.b32.xlu0 %v101_v0, %s131_s10  ;;  %19 = vrot.lane.b32.xlu1 %v103_v1, %s132_s11  ;;  %v104_v3 = vld [vmem:[%s207_s0 + $0xc] sm:$0x1]   ;;  %s133_s16 = smov 56   ;;  %s134_s17 = smov 48   ;;  %v105_v4 = vld [vmem:[%s207_s0 + $0xb] sm:$0x1]  }
   0x3   :  { %v106_v5 = vld [vmem:[%s207_s0 + $0xa] sm:$0x1]   ;;  %v2_v6 = vld [vmem:[%s207_s0] sm:$0x1]   ;;  %s135_s24 = smov 44   ;;  %s136_s25 = smov 40  }
   0x4   :  { %4 = vst.msk [vmem:[#allocation0] sm:$0x1] %vm3_vm0, %v2_v6   ;;  %v107_v7 = vld [vmem:[%s207_s0 + $0x9] sm:$0x1]   ;;  %v108_v8 = vld [vmem:[%s207_s0 + $0x8] sm:$0x1]  }
   0x5   :  { %s137_s30 = smov 36   ;;  %s138_s2 = smov 32   ;;  %v109_v9 = vld [vmem:[%s207_s0 + $0x7] sm:$0x1]   ;;  %v110_v10 = vld [vmem:[%s207_s0 + $0x6] sm:$0x1]  }
   0x6   :  { %13 = vrot.lane.b32.xlu0 %v102_v2, %s133_s16  ;;  %25 = vrot.lane.b32.xlu1 %v104_v3, %s134_s17  ;;  %s139_s7 = smov 28   ;;  %s140_s8 = smov 24   ;;  %v111_v11 = vld [vmem:[%s207_s0 + $0x5] sm:$0x1]   ;;  %v112_v12 = vld [vmem:[%s207_s0 + $0x4] sm:$0x1]  }
   0x7   :  { %s141_s13 = smov 20   ;;  %s142_s14 = smov 16   ;;  %v113_v13 = vld [vmem:[%s207_s0 + $0x3] sm:$0x1]   ;;  %v114_v14 = vld [vmem:[%s207_s0 + $0x2] sm:$0x1]  }
   0x8   :  { %s143_s19 = smov 12   ;;  %s144_s20 = smov 8   ;;  %v115_v15 = vld [vmem:[%s207_s0 + $0x1] sm:$0x1]   ;;  %vm27_vm4 = vcmask 425344   ;;  %vm33_vm5 = vcmask 392544  }
   0x9   :  { %s145_s0 = smov 4   ;;  %vm39_vm6 = vcmask 359744   ;;  %vm45_vm7 = vcmask 326944   ;;  %vm51_vm8 = vcmask 294144   ;;  %vm57_vm9 = vcmask 261344  }
   0xa   :  { %31 = vrot.lane.b32.xlu0 %v105_v4, %s135_s24  ;;  %37 = vrot.lane.b32.xlu1 %v106_v5, %s136_s25  ;;  %vm63_vm10 = vcmask 228544   ;;  %vm69_vm11 = vcmask 195744   ;;  %vm75_vm12 = vcmask 162944   ;;  %vm81_vm13 = vcmask 130144  }
   0xb   :  { %vm87_vm14 = vcmask 97344   ;;  %vm93_vm15 = vcmask 64544  }
   0xe   :  { %43 = vrot.lane.b32.xlu0 %v107_v7, %s137_s30  ;;  %49 = vrot.lane.b32.xlu1 %v108_v8, %s138_s2 }
  0x12   :  { %55 = vrot.lane.b32.xlu0 %v109_v9, %s139_s7  ;;  %61 = vrot.lane.b32.xlu1 %v110_v10, %s140_s8 }
  0x16   :  { %67 = vrot.lane.b32.xlu0 %v111_v11, %s141_s13  ;;  %73 = vrot.lane.b32.xlu1 %v112_v12, %s142_s14 }
  0x1a   :  { %79 = vrot.lane.b32.xlu0 %v113_v13, %s143_s19  ;;  %85 = vrot.lane.b32.xlu1 %v114_v14, %s144_s20 }
  0x1e   :  { %91 = vrot.lane.b32.xlu0 %v115_v15, %s145_s0 }
  0x74   :  { %v8_v16 = vpop.permute.xlu0 %7   ;;  %v20_v17 = vpop.permute.xlu1 %19  }
  0x75   :  { %10 = vst.msk [vmem:[#allocation0] sm:$0x1] %vm9_vm1, %v8_v16  }
  0x78   :  { %v14_v18 = vpop.permute.xlu0 %13   ;;  %v26_v19 = vpop.permute.xlu1 %25  }
  0x79   :  { %16 = vst.msk [vmem:[#allocation0] sm:$0x1] %vm15_vm2, %v14_v18  }
  0x7a   :  { %22 = vst.msk [vmem:[#allocation0] sm:$0x1] %vm21_vm3, %v20_v17  }
  0x7b   :  { %28 = vst.msk [vmem:[#allocation0] sm:$0x1] %vm27_vm4, %v26_v19  }
  0x7c   :  { %v32_v20 = vpop.permute.xlu0 %31   ;;  %v38_v21 = vpop.permute.xlu1 %37  }
  0x7d   :  { %34 = vst.msk [vmem:[#allocation0] sm:$0x1] %vm33_vm5, %v32_v20  }
  0x7e   :  { %40 = vst.msk [vmem:[#allocation0] sm:$0x1] %vm39_vm6, %v38_v21  }
  0x80   :  { %v44_v22 = vpop.permute.xlu0 %43   ;;  %v50_v23 = vpop.permute.xlu1 %49  }
  0x81   :  { %46 = vst.msk [vmem:[#allocation0] sm:$0x1] %vm45_vm7, %v44_v22  }
  0x82   :  { %52 = vst.msk [vmem:[#allocation0] sm:$0x1] %vm51_vm8, %v50_v23  }
  0x84   :  { %v56_v24 = vpop.permute.xlu0 %55   ;;  %v62_v25 = vpop.permute.xlu1 %61  }
  0x85   :  { %58 = vst.msk [vmem:[#allocation0] sm:$0x1] %vm57_vm9, %v56_v24  }
  0x86   :  { %64 = vst.msk [vmem:[#allocation0] sm:$0x1] %vm63_vm10, %v62_v25  }
  0x88   :  { %v68_v26 = vpop.permute.xlu0 %67   ;;  %v74_v27 = vpop.permute.xlu1 %73  }
  0x89   :  { %70 = vst.msk [vmem:[#allocation0] sm:$0x1] %vm69_vm11, %v68_v26  }
  0x8a   :  { %76 = vst.msk [vmem:[#allocation0] sm:$0x1] %vm75_vm12, %v74_v27  }
  0x8c   :  { %v80_v28 = vpop.permute.xlu0 %79   ;;  %v86_v29 = vpop.permute.xlu1 %85  }
  0x8d   :  { %82 = vst.msk [vmem:[#allocation0] sm:$0x1] %vm81_vm13, %v80_v28  }
  0x8e   :  { %88 = vst.msk [vmem:[#allocation0] sm:$0x1] %vm87_vm14, %v86_v29  }
  0x90   :  { %v92_v30 = vpop.permute.xlu0 %91  }
  0x91   :  { %94 = vst.msk [vmem:[#allocation0] sm:$0x1] %vm93_vm15, %v92_v30  }
  0x98   :  { %v98_v31 = vld [vmem:[#allocation0] sm:$0x1] }
  0x99   :  { %100 = vst [vmem:[%s208_s1] sm:$0x1] %v98_v31 }

// kernel: cnn_classifier_forward.1
= control target key start
LH: loop header
LB: loop body
LE: loop exit
PB: predicated region body
PF: predicated region fallthrough
CT: control target
= control target key end

     0   :  { %s1701_s30 = smov 0   ;;  %s1897_s0 = inlined_call_operand.vmem [shape: f32[256,16], index: 0, kind: input, shape index: {}]   ;;  %s1898_s1 = inlined_call_operand.vmem [shape: f32[16,64], index: 1, kind: input, shape index: {}]   ;;  %s1899_s2 = inlined_call_operand.vmem [shape: f32[1,64], index: 2, kind: input, shape index: {}]   ;;  %s1900_s3 = inlined_call_operand.vmem [shape: f32[1,64,64], index: 3, kind: input, shape index: {}]   ;;  %s1901_s4 = inlined_call_operand.vmem [shape: f32[1,1,64], index: 4, kind: input, shape index: {}]   ;;  %s1902_s5 = inlined_call_operand.vmem [shape: f32[64,16], index: 5, kind: input, shape index: {}]   ;;  %s1903_s6 = inlined_call_operand.vmem [shape: f32[1,16], index: 6, kind: input, shape index: {}]   ;;  %s1904_s7 = inlined_call_operand.vmem [shape: f32[16,128], index: 7, kind: input, shape index: {}]   ;;  %s1905_s8 = inlined_call_operand.vmem [shape: f32[1,128], index: 8, kind: input, shape index: {}]   ;;  %s1906_s9 = inlined_call_operand.vmem [shape: f32[256,128], index: 9, kind: output, shape index: {}]  }
   0x1 LB: > { %s1294_s10 = sadd.s32 4294967295, %s1649_s30   ;;  %p1298_p0 = scmp.ge.s32.totalorder %s1649_s30, 1  ;;  %s1649_s30 = sphi %s1701_s30, %s19_s30  }
   0x2   : > { %p288_p1 = scmp.lt.s32.totalorder %s1649_s30, 3 }
   0x4   : > { %p289_p2 = pnand %p1298_p0, %p288_p1 }
   0x5   : > { %v352_v0 = vld [vmem:[%s1898_s1] sm:$0xff] (!%p289_p2)  ;;  %v353_v1 = vld [vmem:[%s1898_s1 + $0x8] sm:$0xff] (!%p289_p2)  ;;  %s1299_s15 = sshll.u32 (!%p289_p2), %s1294_s10, 4  ;;  %v573_v5 = vld [vmem:[%s1900_s3 + $0x10] sm:$0xff] (!%p289_p2)  ;;  %vm361_vm0 = vcmask (!%p289_p2), 130048   ;;  %vm586_vm1 = vcmask (!%p289_p2), 523264  }
   0x6   : > { %292 = sbr.rel (%p289_p2) target bundleno = 916 (0x394), region = 56  ;;  %v571_v2 = vld [vmem:[%s1900_s3] sm:$0xff] (!%p289_p2)  ;;  %v1593_v3 = vpack.c.bf16 (!%p289_p2), %v353_v1, %v352_v0  ;;  %p325_p3 = scmp.lt.s32.totalorder (!%p289_p2), %s1299_s15, 31  ;;  %v572_v4 = vld [vmem:[%s1900_s3 + $0x8] sm:$0xff] (!%p289_p2)  ;;  %v574_v6 = vld [vmem:[%s1900_s3 + $0x18] sm:$0xff] (!%p289_p2) }
   0x7   : > { %v1597_v7 = vpack.c.bf16 (!%p289_p2), %v572_v4, %v571_v2  ;;  %v1601_v8 = vpack.c.bf16 (!%p289_p2), %v574_v6, %v573_v5  ;;  %v575_v9 = vld [vmem:[%s1900_s3 + $0x20] sm:$0xff] (!%p289_p2)  ;;  %v576_v10 = vld [vmem:[%s1900_s3 + $0x28] sm:$0xff] (!%p289_p2)  ;;  %v577_v28 = vld [vmem:[%s1900_s3 + $0x30] sm:$0xff] (!%p289_p2) }
   0x8   : > { %1594 = vmatprep.subr.bf16.mxu0 (!%p289_p2), %v1593_v3  ;;  %v1605_v11 = vpack.c.bf16 (!%p289_p2), %v576_v10, %v575_v9  ;;  %v578_v29 = vld [vmem:[%s1900_s3 + $0x38] sm:$0xff] (!%p289_p2)  ;;  %v796_v31 = vld [vmem:[%s1902_s5] sm:$0xff] (!%p289_p2)  ;;  %v797_v32 = vld [vmem:[%s1902_s5 + $0x8] sm:$0xff] (!%p289_p2) }
   0x9   : > { %1596 = vmatpush3.bf16.msra.mxu0 (!%p289_p2), %v1593_v3  ;;  %1598 = vmatprep.subr.bf16.mxu1 (!%p289_p2), %v1597_v7  ;;  %v1609_v30 = vpack.c.bf16 (!%p289_p2), %v578_v29, %v577_v28  ;;  %v798_v33 = vld [vmem:[%s1902_s5 + $0x10] sm:$0xff] (!%p289_p2)  ;;  %v1613_v34 = vpack.c.bf16 (!%p289_p2), %v797_v32, %v796_v31  ;;  %v799_v35 = vld [vmem:[%s1902_s5 + $0x18] sm:$0xff] (!%p289_p2)  ;;  %v800_v37 = vld [vmem:[%s1902_s5 + $0x20] sm:$0xff] (!%p289_p2) }
   0xa   : > { %1600 = vmatpush3.bf16.msra.mxu1 (!%p289_p2), %v1597_v7  ;;  %v1617_v36 = vpack.c.bf16 (!%p289_p2), %v799_v35, %v798_v33  ;;  %v801_v38 = vld [vmem:[%s1902_s5 + $0x28] sm:$0xff] (!%p289_p2)  ;;  %v802_v40 = vld [vmem:[%s1902_s5 + $0x30] sm:$0xff] (!%p289_p2)  ;;  %v803_v41 = vld [vmem:[%s1902_s5 + $0x38] sm:$0xff] (!%p289_p2) }
   0xb   : > { %1602 = vmatprep.subr.bf16.mxu1 (!%p289_p2), %v1601_v8  ;;  %1614 = vmatprep.subr.bf16.mxu0 (!%p289_p2), %v1613_v34  ;;  %v1621_v39 = vpack.c.bf16 (!%p289_p2), %v801_v38, %v800_v37  ;;  %v1625_v42 = vpack.c.bf16 (!%p289_p2), %v803_v41, %v802_v40  ;;  %v1303_v43 = vld [vmem:[%s1899_s2] ss:$0 sm:$0xff] (!%p289_p2)  ;;  %v1021_v29 = vld [vmem:[%s1904_s7 + $0x8] sm:$0xff] (!%p289_p2) }
   0xc   : > { %v1020_v28 = vld [vmem:[%s1904_s7] sm:$0xff] (!%p289_p2) }
   0xd   : > { %s1908_s15 = smov (!%p325_p3, %s1299_s15), 31  ;;  %v1320_v31 = vld [vmem:[%s1901_s4] ss:$0 sm:$0xff] }
   0xe   : > { %s1300_s28 = sshll.u32 %s1908_s15, 3  ;;  %1604 = vmatpush3.bf16.msra.mxu1 %v1601_v8 }
   0xf   : > { %s1741_s11 = scalar_lea.vmem %s1897_s0, %s1300_s28  ;;  %1606 = vmatprep.subr.bf16.mxu1 %v1605_v11  ;;  %s1876_s10 = scalar_lea.vmem %s1906_s9, %s1300_s28 }
  0x10   : > { %v336_v12 = vld [vmem:[%s1741_s11] sm:$0xff]  ;;  %v337_v13 = vld [vmem:[%s1741_s11 + $0x8] sm:$0xff]  ;;  %v338_v14 = vld [vmem:[%s1741_s11 + $0x10] sm:$0xff] }
  0x11   : > { %1461 = vmatprep.mubr.msk.f32.mxu0 %vm361_vm0, %v336_v12  ;;  %v339_v15 = vld [vmem:[%s1741_s11 + $0x18] sm:$0xff]  ;;  %v340_v16 = vld [vmem:[%s1741_s11 + $0x20] sm:$0xff]  ;;  %v341_v17 = vld [vmem:[%s1741_s11 + $0x28] sm:$0xff] }
  0x12   : > { %1462 = vmatmul.mubr.msk.f32.vlgmr.msra.gmra.mrb[0].mxu0 %vm361_vm0, %v337_v13  ;;  %1608 = vmatpush3.bf16.msra.mxu1 %v1605_v11  ;;  %v342_v18 = vld [vmem:[%s1741_s11 + $0x30] sm:$0xff]  ;;  %v343_v19 = vld [vmem:[%s1741_s11 + $0x38] sm:$0xff]  ;;  %v344_v20 = vld [vmem:[%s1741_s11 + $0x40] sm:$0xff] }
  0x13   : > { %1464 = vmatprep.mubr.msk.f32.mxu0 %vm361_vm0, %v338_v14  ;;  %v345_v21 = vld [vmem:[%s1741_s11 + $0x48] sm:$0xff]  ;;  %v346_v22 = vld [vmem:[%s1741_s11 + $0x50] sm:$0xff]  ;;  %v347_v23 = vld [vmem:[%s1741_s11 + $0x58] sm:$0xff]  ;;  %1610 = vmatprep.subr.bf16.mxu1 %v1609_v30 }
  0x14   : > { %v348_v24 = vld [vmem:[%s1741_s11 + $0x60] sm:$0xff]  ;;  %v349_v25 = vld [vmem:[%s1741_s11 + $0x68] sm:$0xff]  ;;  %v350_v26 = vld [vmem:[%s1741_s11 + $0x70] sm:$0xff]  ;;  %1616 = vmatpush3.bf16.msra.mxu0 %v1613_v34 }
  0x15   : > { %v351_v27 = vld [vmem:[%s1741_s11 + $0x78] sm:$0xff]  ;;  %1618 = vmatprep.subr.bf16.mxu0 %v1617_v36 }
  0x16   : > { %1465 = vmatmul.mubr.msk.f32.gmra.mrb[2].mxu0 %vm361_vm0, %v339_v15  ;;  %1612 = vmatpush3.bf16.msra.mxu1 %v1609_v30  ;;  %v1629_v30 = vpack.c.bf16 %v1021_v29, %v1020_v28 }
  0x17   : > { %1467 = vmatprep.mubr.msk.f32.mxu0 %vm361_vm0, %v340_v16 }
  0x18   : > { %1620 = vmatpush3.bf16.msra.mxu0 %v1617_v36  ;;  %1633 = vmatprep.subr.bf16.mxu1 %v1629_v30 }
  0x19   : > { %1622 = vmatprep.subr.bf16.mxu0 %v1621_v39 }
  0x1a   : > { %1468 = vmatmul.mubr.msk.f32.gmra.mrb[4].mxu0 %vm361_vm0, %v341_v17 }
  0x1b   : > { %1470 = vmatprep.mubr.msk.f32.mxu0 %vm361_vm0, %v342_v18 }
  0x1c   : > { %1624 = vmatpush3.bf16.msra.mxu0 %v1621_v39 }
  0x1d   : > { %1626 = vmatprep.subr.bf16.mxu0 %v1625_v42 }
  0x1e   : > { %1471 = vmatmul.mubr.msk.f32.gmra.mrb[6].mxu0 %vm361_vm0, %v343_v19 }
  0x1f   : > { %1473 = vmatprep.mubr.msk.f32.mxu0 %vm361_vm0, %v344_v20 }
  0x20   : > { %1628 = vmatpush3.bf16.msra.mxu0 %v1625_v42 }
  0x21   : > { %1630 = vmatprep.subr.bf16.mxu0 %v1629_v30 }
  0x22   : > { %1474 = vmatmul.mubr.msk.f32.gmra.mrb[8].mxu0 %vm361_vm0, %v345_v21 }
  0x23   : > { %1476 = vmatprep.mubr.msk.f32.mxu0 %vm361_vm0, %v346_v22 }
  0x26   : > { %1477 = vmatmul.mubr.msk.f32.gmra.mrb[10].mxu0 %vm361_vm0, %v347_v23 }
  0x27   : > { %1479 = vmatprep.mubr.msk.f32.mxu0 %vm361_vm0, %v348_v24 }
  0x2a   : > { %1480 = vmatmul.mubr.msk.f32.gmra.mrb[12].mxu0 %vm361_vm0, %v349_v25 }
  0x2b   : > { %1482 = vmatprep.mubr.msk.f32.mxu0 %vm361_vm0, %v350_v26 }
  0x2e   : > { %1483 = vmatmul.mubr.msk.f32.gmra.mrb[14].mxu0 %vm361_vm0, %v351_v27 }
  0xe5   : > { %v1463_v44 = vpop.f32.mrb[0].mxu0 }
  0xe6   : > { %v482_v45 = vadd.f32 %v1463_v44, %v1303_v43  ;;  %v476_v46 = vpop.f32.mrb[1].mxu0 }
  0xe7   : > { %v477_v47 = vadd.f32 %v1303_v43, %v476_v46 }
  0xe8   : > { %v556_v50 = vmax.f32 %v482_v45, 0.0 }
  0xe9   : > { %v555_v48 = vmax.f32 %v477_v47, 0.0  ;;  %v1466_v49 = vpop.f32.mrb[2].mxu0 }
  0xea   : > { %v492_v51 = vadd.f32 %v1466_v49, %v1303_v43  ;;  %v486_v52 = vpop.f32.mrb[3].mxu0 }
  0xeb   : > { %v487_v53 = vadd.f32 %v1303_v43, %v486_v52  ;;  %1501 = vmatprep.mubr.msk.f32.mxu1 %vm586_vm1, %v555_v48 }
  0xec   : > { %1502 = vmatmul.mubr.msk.f32.vlgmr.msra.gmra.mrb[0].mxu1 %vm586_vm1, %v556_v50  ;;  %v558_v56 = vmax.f32 %v492_v51, 0.0 }
  0xed   : > { %v557_v54 = vmax.f32 %v487_v53, 0.0  ;;  %v1469_v55 = vpop.f32.mrb[4].mxu0  ;;  %1634 = vmatpush3.bf16.msra.mxu1 %v1629_v30 }
  0xee   : > { %v502_v57 = vadd.f32 %v1469_v55, %v1303_v43  ;;  %v496_v58 = vpop.f32.mrb[5].mxu0 }
  0xef   : > { %v497_v59 = vadd.f32 %v1303_v43, %v496_v58  ;;  %1504 = vmatprep.mubr.msk.f32.mxu1 %vm586_vm1, %v557_v54 }
  0xf0   : > { %1505 = vmatmul.mubr.msk.f32.gmra.mrb[2].mxu1 %vm586_vm1, %v558_v56  ;;  %v560_v62 = vmax.f32 %v502_v57, 0.0 }
  0xf1   : > { %v559_v60 = vmax.f32 %v497_v59, 0.0  ;;  %v1472_v61 = vpop.f32.mrb[6].mxu0 }
  0xf2   : > { %v512_v63 = vadd.f32 %v1472_v61, %v1303_v43  ;;  %v506_v0 = vpop.f32.mrb[7].mxu0 }
  0xf3   : > { %v507_v1 = vadd.f32 %v1303_v43, %v506_v0  ;;  %1507 = vmatprep.mubr.msk.f32.mxu1 %vm586_vm1, %v559_v60 }
  0xf4   : > { %1508 = vmatmul.mubr.msk.f32.gmra.mrb[4].mxu1 %vm586_vm1, %v560_v62  ;;  %v562_v4 = vmax.f32 %v512_v63, 0.0 }
  0xf5   : > { %v561_v2 = vmax.f32 %v507_v1, 0.0  ;;  %v1475_v3 = vpop.f32.mrb[8].mxu0 }
  0xf6   : > { %v522_v5 = vadd.f32 %v1475_v3, %v1303_v43  ;;  %v516_v6 = vpop.f32.mrb[9].mxu0 }
  0xf7   : > { %v517_v7 = vadd.f32 %v1303_v43, %v516_v6  ;;  %1510 = vmatprep.mubr.msk.f32.mxu1 %vm586_vm1, %v561_v2 }
  0xf8   : > { %1511 = vmatmul.mubr.msk.f32.gmra.mrb[6].mxu1 %vm586_vm1, %v562_v4  ;;  %v564_v10 = vmax.f32 %v522_v5, 0.0 }
  0xf9   : > { %v563_v8 = vmax.f32 %v517_v7, 0.0  ;;  %v1478_v9 = vpop.f32.mrb[10].mxu0 }
  0xfa   : > { %v532_v11 = vadd.f32 %v1478_v9, %v1303_v43  ;;  %v526_v12 = vpop.f32.mrb[11].mxu0 }
  0xfb   : > { %v527_v13 = vadd.f32 %v1303_v43, %v526_v12  ;;  %1513 = vmatprep.mubr.msk.f32.mxu1 %vm586_vm1, %v563_v8 }
  0xfc   : > { %1514 = vmatmul.mubr.msk.f32.gmra.mrb[8].mxu1 %vm586_vm1, %v564_v10  ;;  %v566_v16 = vmax.f32 %v532_v11, 0.0 }
  0xfd   : > { %v565_v14 = vmax.f32 %v527_v13, 0.0  ;;  %v1481_v15 = vpop.f32.mrb[12].mxu0 }
  0xfe   : > { %v542_v17 = vadd.f32 %v1481_v15, %v1303_v43  ;;  %v536_v18 = vpop.f32.mrb[13].mxu0 }
  0xff   : > { %v537_v19 = vadd.f32 %v1303_v43, %v536_v18  ;;  %1516 = vmatprep.mubr.msk.f32.mxu1 %vm586_vm1, %v565_v14 }
 0x100   : > { %1517 = vmatmul.mubr.msk.f32.gmra.mrb[10].mxu1 %vm586_vm1, %v566_v16  ;;  %v568_v22 = vmax.f32 %v542_v17, 0.0  ;;  %v1337_v16 = vld [vmem:[%s1903_s6] ss:$0 sm:$0xff] }
 0x101   : > { %v567_v20 = vmax.f32 %v537_v19, 0.0  ;;  %v1484_v21 = vpop.f32.mrb[14].mxu0 }
 0x102   : > { %v552_v23 = vadd.f32 %v1484_v21, %v1303_v43  ;;  %v546_v24 = vpop.f32.mrb[15].mxu0 }
 0x103   : > { %v547_v25 = vadd.f32 %v1303_v43, %v546_v24  ;;  %1519 = vmatprep.mubr.msk.f32.mxu1 %vm586_vm1, %v567_v20 }
 0x104   : > { %1520 = vmatmul.mubr.msk.f32.gmra.mrb[12].mxu1 %vm586_vm1, %v568_v22  ;;  %v570_v27 = vmax.f32 %v552_v23, 0.0 }
 0x105   : > { %v569_v26 = vmax.f32 %v547_v25, 0.0 }
 0x107   : > { %1522 = vmatprep.mubr.msk.f32.mxu1 %vm586_vm1, %v569_v26 }
 0x108   : > { %1523 = vmatmul.mubr.msk.f32.gmra.mrb[14].mxu1 %vm586_vm1, %v570_v27 }
 0x1bf   : > { %v1503_v32 = vpop.f32.mrb[0].mxu1 }
 0x1c0   : > { %v707_v33 = vadd.f32 %v1503_v32, %v1320_v31  ;;  %v701_v34 = vpop.f32.mrb[1].mxu1 }
 0x1c1   : > { %v702_v35 = vadd.f32 %v1320_v31, %v701_v34 }
 0x1c2   : > { %v781_v38 = vmax.f32 %v707_v33, 0.0 }
 0x1c3   : > { %v780_v36 = vmax.f32 %v702_v35, 0.0  ;;  %v1506_v37 = vpop.f32.mrb[2].mxu1 }
 0x1c4   : > { %v717_v39 = vadd.f32 %v1506_v37, %v1320_v31  ;;  %v711_v40 = vpop.f32.mrb[3].mxu1 }
 0x1c5   : > { %v712_v41 = vadd.f32 %v1320_v31, %v711_v40  ;;  %1541 = vmatprep.mubr.msk.f32.mxu0 %vm586_vm1, %v780_v36 }
 0x1c6   : > { %1542 = vmatmul.mubr.msk.f32.vlgmr.msra.gmra.mrb[16].mxu0 %vm586_vm1, %v781_v38  ;;  %v783_v44 = vmax.f32 %v717_v39, 0.0 }
 0x1c7   : > { %v782_v42 = vmax.f32 %v712_v41, 0.0  ;;  %v1509_v43 = vpop.f32.mrb[4].mxu1  ;;  %1632 = vmatpush3.bf16.msra.mxu0 %v1629_v30 }
 0x1c8   : > { %v727_v45 = vadd.f32 %v1509_v43, %v1320_v31  ;;  %v721_v46 = vpop.f32.mrb[5].mxu1 }
 0x1c9   : > { %v722_v47 = vadd.f32 %v1320_v31, %v721_v46  ;;  %1544 = vmatprep.mubr.msk.f32.mxu0 %vm586_vm1, %v782_v42 }
 0x1ca   : > { %1545 = vmatmul.mubr.msk.f32.gmra.mrb[18].mxu0 %vm586_vm1, %v783_v44  ;;  %v785_v50 = vmax.f32 %v727_v45, 0.0 }
 0x1cb   : > { %v784_v48 = vmax.f32 %v722_v47, 0.0  ;;  %v1512_v49 = vpop.f32.mrb[6].mxu1 }
 0x1cc   : > { %v737_v51 = vadd.f32 %v1512_v49, %v1320_v31  ;;  %v731_v52 = vpop.f32.mrb[7].mxu1 }
 0x1cd   : > { %v732_v53 = vadd.f32 %v1320_v31, %v731_v52  ;;  %1547 = vmatprep.mubr.msk.f32.mxu0 %vm586_vm1, %v784_v48 }
 0x1ce   : > { %1548 = vmatmul.mubr.msk.f32.gmra.mrb[20].mxu0 %vm586_vm1, %v785_v50  ;;  %v787_v56 = vmax.f32 %v737_v51, 0.0 }
 0x1cf   : > { %v786_v54 = vmax.f32 %v732_v53, 0.0  ;;  %v1515_v55 = vpop.f32.mrb[8].mxu1 }
 0x1d0   : > { %v747_v57 = vadd.f32 %v1515_v55, %v1320_v31  ;;  %v741_v58 = vpop.f32.mrb[9].mxu1 }
 0x1d1   : > { %v742_v59 = vadd.f32 %v1320_v31, %v741_v58  ;;  %1550 = vmatprep.mubr.msk.f32.mxu0 %vm586_vm1, %v786_v54 }
 0x1d2   : > { %1551 = vmatmul.mubr.msk.f32.gmra.mrb[22].mxu0 %vm586_vm1, %v787_v56  ;;  %v789_v62 = vmax.f32 %v747_v57, 0.0 }
 0x1d3   : > { %v788_v60 = vmax.f32 %v742_v59, 0.0  ;;  %v1518_v61 = vpop.f32.mrb[10].mxu1 }
 0x1d4   : > { %v757_v63 = vadd.f32 %v1518_v61, %v1320_v31  ;;  %v751_v0 = vpop.f32.mrb[11].mxu1 }
 0x1d5   : > { %v752_v1 = vadd.f32 %v1320_v31, %v751_v0  ;;  %1553 = vmatprep.mubr.msk.f32.mxu0 %vm586_vm1, %v788_v60 }
 0x1d6   : > { %1554 = vmatmul.mubr.msk.f32.gmra.mrb[24].mxu0 %vm586_vm1, %v789_v62  ;;  %v791_v4 = vmax.f32 %v757_v63, 0.0 }
 0x1d7   : > { %v790_v2 = vmax.f32 %v752_v1, 0.0  ;;  %v1521_v3 = vpop.f32.mrb[12].mxu1  ;;  %v1354_v1 = vld [vmem:[%s1905_s8] ss:$0 sm:$0xff] }
 0x1d8   : > { %v767_v5 = vadd.f32 %v1521_v3, %v1320_v31  ;;  %v761_v6 = vpop.f32.mrb[13].mxu1 }
 0x1d9   : > { %v762_v7 = vadd.f32 %v1320_v31, %v761_v6  ;;  %1556 = vmatprep.mubr.msk.f32.mxu0 %vm586_vm1, %v790_v2 }
 0x1da   : > { %1557 = vmatmul.mubr.msk.f32.gmra.mrb[26].mxu0 %vm586_vm1, %v791_v4  ;;  %v793_v10 = vmax.f32 %v767_v5, 0.0 }
 0x1db   : > { %v792_v8 = vmax.f32 %v762_v7, 0.0  ;;  %v1524_v9 = vpop.f32.mrb[14].mxu1 }
 0x1dc   : > { %v777_v11 = vadd.f32 %v1524_v9, %v1320_v31  ;;  %v771_v12 = vpop.f32.mrb[15].mxu1 }
 0x1dd   : > { %v772_v13 = vadd.f32 %v1320_v31, %v771_v12  ;;  %1559 = vmatprep.mubr.msk.f32.mxu0 %vm586_vm1, %v792_v8 }
 0x1de   : > { %1560 = vmatmul.mubr.msk.f32.gmra.mrb[28].mxu0 %vm586_vm1, %v793_v10  ;;  %v795_v15 = vmax.f32 %v777_v11, 0.0 }
 0x1df   : > { %v794_v14 = vmax.f32 %v772_v13, 0.0 }
 0x1e1   : > { %1562 = vmatprep.mubr.msk.f32.mxu0 %vm586_vm1, %v794_v14 }
 0x1e2   : > { %1563 = vmatmul.mubr.msk.f32.gmra.mrb[30].mxu0 %vm586_vm1, %v795_v15 }
 0x299   : > { %v1543_v17 = vpop.f32.mrb[16].mxu0 }
 0x29a   : > { %v931_v18 = vadd.f32 %v1543_v17, %v1337_v16  ;;  %v925_v19 = vpop.f32.mrb[17].mxu0 }
 0x29b   : > { %v926_v20 = vadd.f32 %v1337_v16, %v925_v19 }
 0x29c   : > { %v1005_v23 = vmax.f32 %v931_v18, 0.0 }
 0x29d   : > { %v1004_v21 = vmax.f32 %v926_v20, 0.0  ;;  %v1546_v22 = vpop.f32.mrb[18].mxu0 }
 0x29e   : > { %v941_v24 = vadd.f32 %v1546_v22, %v1337_v16  ;;  %v935_v25 = vpop.f32.mrb[19].mxu0 }
 0x29f   : > { %v936_v26 = vadd.f32 %v1337_v16, %v935_v25  ;;  %1569 = vmatprep.mubr.msk.f32.mxu0 %vm361_vm0, %v1004_v21 }
 0x2a0   : > { %1570 = vmatmul.mubr.msk.f32.vlgmr.msra.gmra.mrb[32].mxu0 %vm361_vm0, %v1005_v23  ;;  %v1007_v29 = vmax.f32 %v941_v24, 0.0 }
 0x2a1   : > { %v1006_v27 = vmax.f32 %v936_v26, 0.0  ;;  %v1549_v28 = vpop.f32.mrb[20].mxu0 }
 0x2a2   : > { %v951_v30 = vadd.f32 %v1549_v28, %v1337_v16  ;;  %v945_v31 = vpop.f32.mrb[21].mxu0 }
 0x2a3   : > { %v946_v32 = vadd.f32 %v1337_v16, %v945_v31  ;;  %1572 = vmatprep.mubr.msk.f32.mxu1 %vm361_vm0, %v1006_v27 }
 0x2a4   : > { %1573 = vmatmul.mubr.msk.f32.vlgmr.msra.gmra.mrb[16].mxu1 %vm361_vm0, %v1007_v29  ;;  %v1009_v35 = vmax.f32 %v951_v30, 0.0 }
 0x2a5   : > { %v1008_v33 = vmax.f32 %v946_v32, 0.0  ;;  %v1552_v34 = vpop.f32.mrb[22].mxu0 }
 0x2a6   : > { %v961_v36 = vadd.f32 %v1552_v34, %v1337_v16  ;;  %v955_v37 = vpop.f32.mrb[23].mxu0 }
 0x2a7   : > { %v956_v38 = vadd.f32 %v1337_v16, %v955_v37  ;;  %1575 = vmatprep.mubr.msk.f32.mxu1 %vm361_vm0, %v1008_v33 }
 0x2a8   : > { %1576 = vmatmul.mubr.msk.f32.gmra.mrb[18].mxu1 %vm361_vm0, %v1009_v35  ;;  %v1011_v41 = vmax.f32 %v961_v36, 0.0 }
 0x2a9   : > { %v1010_v39 = vmax.f32 %v956_v38, 0.0  ;;  %v1555_v40 = vpop.f32.mrb[24].mxu0 }
 0x2aa   : > { %v971_v42 = vadd.f32 %v1555_v40, %v1337_v16  ;;  %v965_v43 = vpop.f32.mrb[25].mxu0 }
 0x2ab   : > { %v966_v44 = vadd.f32 %v1337_v16, %v965_v43  ;;  %1578 = vmatprep.mubr.msk.f32.mxu1 %vm361_vm0, %v1010_v39 }
 0x2ac   : > { %1579 = vmatmul.mubr.msk.f32.gmra.mrb[20].mxu1 %vm361_vm0, %v1011_v41  ;;  %v1013_v47 = vmax.f32 %v971_v42, 0.0 }
 0x2ad   : > { %v1012_v45 = vmax.f32 %v966_v44, 0.0  ;;  %v1558_v46 = vpop.f32.mrb[26].mxu0 }
 0x2ae   : > { %v981_v48 = vadd.f32 %v1558_v46, %v1337_v16  ;;  %v975_v49 = vpop.f32.mrb[27].mxu0 }
 0x2af   : > { %v976_v50 = vadd.f32 %v1337_v16, %v975_v49  ;;  %1581 = vmatprep.mubr.msk.f32.mxu1 %vm361_vm0, %v1012_v45 }
 0x2b0   : > { %1582 = vmatmul.mubr.msk.f32.gmra.mrb[22].mxu1 %vm361_vm0, %v1013_v47  ;;  %v1015_v53 = vmax.f32 %v981_v48, 0.0 }
 0x2b1   : > { %v1014_v51 = vmax.f32 %v976_v50, 0.0  ;;  %v1561_v52 = vpop.f32.mrb[28].mxu0 }
 0x2b2   : > { %v991_v54 = vadd.f32 %v1561_v52, %v1337_v16  ;;  %v985_v55 = vpop.f32.mrb[29].mxu0 }
 0x2b3   : > { %v986_v56 = vadd.f32 %v1337_v16, %v985_v55  ;;  %1584 = vmatprep.mubr.msk.f32.mxu1 %vm361_vm0, %v1014_v51 }
 0x2b4   : > { %1585 = vmatmul.mubr.msk.f32.gmra.mrb[24].mxu1 %vm361_vm0, %v1015_v53  ;;  %v1017_v59 = vmax.f32 %v991_v54, 0.0 }
 0x2b5   : > { %v1016_v57 = vmax.f32 %v986_v56, 0.0  ;;  %v1564_v58 = vpop.f32.mrb[30].mxu0 }
 0x2b6   : > { %v1001_v60 = vadd.f32 %v1564_v58, %v1337_v16  ;;  %v995_v61 = vpop.f32.mrb[31].mxu0 }
 0x2b7   : > { %v996_v62 = vadd.f32 %v1337_v16, %v995_v61  ;;  %1587 = vmatprep.mubr.msk.f32.mxu1 %vm361_vm0, %v1016_v57 }
 0x2b8   : > { %1588 = vmatmul.mubr.msk.f32.gmra.mrb[26].mxu1 %vm361_vm0, %v1017_v59  ;;  %v1019_v0 = vmax.f32 %v1001_v60, 0.0 }
 0x2b9   : > { %v1018_v63 = vmax.f32 %v996_v62, 0.0 }
 0x2bb   : > { %1590 = vmatprep.mubr.msk.f32.mxu1 %vm361_vm0, %v1018_v63 }
 0x2bc   : > { %1591 = vmatmul.mubr.msk.f32.gmra.mrb[28].mxu1 %vm361_vm0, %v1019_v0 }
 0x373   : > { %v1571_v2 = vpop.f32.mrb[32].mxu0 }
 0x374   : > { %v1149_v3 = vadd.f32 %v1571_v2, %v1354_v1  ;;  %v1143_v4 = vpop.f32.mrb[33].mxu0 }
 0x375   : > { %v1144_v5 = vadd.f32 %v1354_v1, %v1143_v4 }
 0x376   : > { %1223 = vst [vmem:[%s1876_s10 + $0x8] sm:$0xff] %v1149_v3 }
 0x377   : > { %1222 = vst [vmem:[%s1876_s10] sm:$0xff] %v1144_v5  ;;  %v1574_v6 = vpop.f32.mrb[16].mxu1 }
 0x378   : > { %v1159_v7 = vadd.f32 %v1574_v6, %v1354_v1  ;;  %v1153_v8 = vpop.f32.mrb[17].mxu1 }
 0x379   : > { %v1154_v9 = vadd.f32 %v1354_v1, %v1153_v8 }
 0x37a   : > { %1225 = vst [vmem:[%s1876_s10 + $0x18] sm:$0xff] %v1159_v7 }
 0x37b   : > { %1224 = vst [vmem:[%s1876_s10 + $0x10] sm:$0xff] %v1154_v9  ;;  %v1577_v10 = vpop.f32.mrb[18].mxu1 }
 0x37c   : > { %v1169_v11 = vadd.f32 %v1577_v10, %v1354_v1  ;;  %v1163_v12 = vpop.f32.mrb[19].mxu1 }
 0x37d   : > { %v1164_v13 = vadd.f32 %v1354_v1, %v1163_v12 }
 0x37e   : > { %1227 = vst [vmem:[%s1876_s10 + $0x28] sm:$0xff] %v1169_v11 }
 0x37f   : > { %1226 = vst [vmem:[%s1876_s10 + $0x20] sm:$0xff] %v1164_v13  ;;  %v1580_v14 = vpop.f32.mrb[20].mxu1 }
 0x380   : > { %v1179_v15 = vadd.f32 %v1580_v14, %v1354_v1  ;;  %v1173_v16 = vpop.f32.mrb[21].mxu1 }
 0x381   : > { %v1174_v17 = vadd.f32 %v1354_v1, %v1173_v16 }
 0x382   : > { %1229 = vst [vmem:[%s1876_s10 + $0x38] sm:$0xff] %v1179_v15 }
 0x383   : > { %1228 = vst [vmem:[%s1876_s10 + $0x30] sm:$0xff] %v1174_v17  ;;  %v1583_v18 = vpop.f32.mrb[22].mxu1 }
 0x384   : > { %v1189_v19 = vadd.f32 %v1583_v18, %v1354_v1  ;;  %v1183_v20 = vpop.f32.mrb[23].mxu1 }
 0x385   : > { %v1184_v21 = vadd.f32 %v1354_v1, %v1183_v20 }
 0x386   : > { %1231 = vst [vmem:[%s1876_s10 + $0x48] sm:$0xff] %v1189_v19 }
 0x387   : > { %1230 = vst [vmem:[%s1876_s10 + $0x40] sm:$0xff] %v1184_v21  ;;  %v1586_v22 = vpop.f32.mrb[24].mxu1 }
 0x388   : > { %v1199_v23 = vadd.f32 %v1586_v22, %v1354_v1  ;;  %v1193_v24 = vpop.f32.mrb[25].mxu1 }
 0x389   : > { %v1194_v25 = vadd.f32 %v1354_v1, %v1193_v24 }
 0x38a   : > { %1233 = vst [vmem:[%s1876_s10 + $0x58] sm:$0xff] %v1199_v23 }
 0x38b   : > { %1232 = vst [vmem:[%s1876_s10 + $0x50] sm:$0xff] %v1194_v25  ;;  %v1589_v26 = vpop.f32.mrb[26].mxu1 }
 0x38c   : > { %v1209_v27 = vadd.f32 %v1589_v26, %v1354_v1  ;;  %v1203_v28 = vpop.f32.mrb[27].mxu1 }
 0x38d   : > { %v1204_v29 = vadd.f32 %v1354_v1, %v1203_v28 }
 0x38e   : > { %1235 = vst [vmem:[%s1876_s10 + $0x68] sm:$0xff] %v1209_v27 }
 0x38f   : > { %1234 = vst [vmem:[%s1876_s10 + $0x60] sm:$0xff] %v1204_v29  ;;  %v1592_v30 = vpop.f32.mrb[28].mxu1 }
 0x390   : > { %v1219_v31 = vadd.f32 %v1592_v30, %v1354_v1  ;;  %v1213_v32 = vpop.f32.mrb[29].mxu1 }
 0x391   : > { %v1214_v33 = vadd.f32 %v1354_v1, %v1213_v32 }
 0x392   : > { %1237 = vst [vmem:[%s1876_s10 + $0x78] sm:$0xff] %v1219_v31 }
 0x393   : > { %1236 = vst [vmem:[%s1876_s10 + $0x70] sm:$0xff] %v1214_v33 }
 0x394 PF: > { %s19_s30 = sadd.s32 1, %s1649_s30  }
 0x395   : > { %p16_p4 = scmp.ge.s32.totalorder %s19_s30, 4  }
 0x397   :  { %18 = sbr.rel (!%p16_p4) target bundleno = 1 (0x1), region = 86 }

</bundles_post_ra>
